<compile_context>
chip_gen: v6e
topology: v6e:2x2x1
jax: 0.10.0
libtpu: 0.0.40
codegen_flags: <defaults>
</compile_context>

<pallas_src>
import jax
import jax.numpy as jnp
from jax.experimental import pallas as pl
from jax.experimental.pallas import tpu as pltpu

NUM_CLASSES = 50
C_PAD = 128          # lane-dense class / hidden padding inside the kernel
NEG_INF = -1e30      # finite "minus infinity" bias for padded class columns
TB_MAX = 1024        # batch rows per grid step (sized for v7x 32 MiB scoped VMEM)


def code2bit_kernel(inp_ref, tgt_ref, w_ref, b_ref, loss_ref, pred_ref):
    """One batch tile: two MXU dots + sigmoid + lane-dense logits + CE partial sum."""
    mm = w_ref.dtype                    # matmul operand dtype (f32 or bf16)
    D = inp_ref.shape[-1]               # input / hidden dim
    W = w_ref.shape[-1]                 # padded lane width (>= 128)
    Dr = w_ref.shape[0] - W             # sublane-aligned row offset of the w2 block

    x = inp_ref[...]                                              # (TB, D), mm dtype
    w1 = w_ref[0:D, :]                                            # (D, W), lanes D: zero
    w2 = w_ref[Dr:, :]                                            # (W, W), rows D:/cols C: zero
    b1 = b_ref[0:1, :]                                            # (1, W) f32, lanes D: zero
    b2 = b_ref[1:2, :]                                            # (1, W) f32, NEG_INF pad cols

    # --- Linear1 + sigmoid: MXU matmul, f32 accumulate, f32 VPU/EUP epilogue ---
    h = jnp.dot(x, w1, preferred_element_type=jnp.float32) + b1   # (TB, W) f32
    h = jax.nn.sigmoid(h)
    # Padded h lanes become sigmoid(0)=0.5; they hit zero rows of w2 -> contribute 0.

    # --- Linear2 -> lane-dense padded logits ---
    logits = jnp.dot(h.astype(mm), w2,
                     preferred_element_type=jnp.float32) + b2     # (TB, W) f32
    pred_ref[...] = logits                                        # unmasked 128-lane store

    # --- Cross entropy: per-tile partial sum (batch mean taken in the wrapper) ---
    TB, CP = logits.shape
    m = jnp.max(logits, axis=-1, keepdims=True)                   # (TB, 1)
    lse = m + jnp.log(jnp.sum(jnp.exp(logits - m), axis=-1, keepdims=True))
    classes = jax.lax.broadcasted_iota(jnp.int32, (TB, CP), 1)
    tgt = tgt_ref[...]                                            # (TB, 1) int32, -1 = padded row
    picked = jnp.sum(jnp.where(classes == tgt, logits, 0.0),
                     axis=-1, keepdims=True)                      # (TB, 1)
    row_loss = jnp.where(tgt >= 0, lse - picked, 0.0)             # mask padded rows
    loss_ref[0, 0] = jnp.sum(row_loss)                            # scalar partial -> SMEM


def prepare_params(w1, b1, w2, b2, matmul_dtype=jnp.float32):
    """One-time parameter glue, hoisted out of the hot path.

    Packs both PyTorch-layout (out,in) weights into one lane-dense slab
    (matmul dtype) and both biases into a tiny f32 slab, so the kernel prologue
    is 4 input DMAs (inp, tgt, weights, biases) instead of 6, and every
    in-kernel parameter slice is a full-lane, sublane-aligned static view.

    matmul_dtype=jnp.bfloat16 puts both dots on the native bf16 MXU path on
    v5e / v6e / v7x (f32 accumulation; biases and sigmoid/CE epilogue stay f32).
    """
    D = w1.shape[0]
    C = w2.shape[0]
    W = max(C_PAD, pl.cdiv(D, 128) * 128)        # shared lane width for hidden & class dims
    Dr = pl.cdiv(D, 8) * 8                       # sublane-aligned start row of the w2 block

    w1_t = jnp.asarray(w1, jnp.float32).T        # (D, D)
    w2_t = jnp.asarray(w2, jnp.float32).T        # (D, C)
    w_pack = jnp.zeros((Dr + W, W), jnp.float32)
    w_pack = w_pack.at[:D, :D].set(w1_t)         # linear1 weights
    w_pack = w_pack.at[Dr:Dr + D, :C].set(w2_t)  # linear2 weights (class cols C: stay zero)
    w_pack = w_pack.astype(matmul_dtype)

    b_pack = jnp.zeros((2, W), jnp.float32)
    b_pack = b_pack.at[0, :D].set(jnp.asarray(b1, jnp.float32))
    b_pack = b_pack.at[1, :].set(NEG_INF)        # padded class cols never win max / lse
    b_pack = b_pack.at[1, :C].set(jnp.asarray(b2, jnp.float32))
    return (w_pack, b_pack)


def _code2bit_forward_impl(inp, tgt, params, num_classes):
    w_pack, b_pack = params
    mm_dtype = w_pack.dtype
    B, D = inp.shape
    WP, W = w_pack.shape                         # WP = Dr + W

    # Batch tiling: single block at small B (no per-step overhead); a 1-D
    # "parallel" grid over B at scale (amortizes launch/DMA, uses both v7x TCs).
    TB = B if B <= TB_MAX else TB_MAX
    n_tiles = pl.cdiv(B, TB)
    Bp = n_tiles * TB

    inp_p = inp.astype(mm_dtype)                 # bf16 input DMA on the bf16 MXU path
    tgt_p = tgt.astype(jnp.int32).reshape(B, 1)
    if Bp != B:                                  # pad ragged batch; padded rows masked via tgt=-1
        inp_p = jnp.pad(inp_p, ((0, Bp - B), (0, 0)))
        tgt_p = jnp.pad(tgt_p, ((0, Bp - B), (0, 0)), constant_values=-1)

    itemsize = jnp.dtype(mm_dtype).itemsize
    cost = pl.CostEstimate(
        flops=2 * Bp * (D * W + W * W),
        transcendentals=Bp * (2 * W + 1),
        bytes_accessed=(Bp * D * itemsize + Bp * 4          # inp + tgt
                        + w_pack.size * itemsize + b_pack.size * 4
                        + Bp * W * 4 + n_tiles * 4),         # pred + partial losses
    )

    partial_loss, pred_pad = pl.pallas_call(
        code2bit_kernel,
        grid=(n_tiles,),
        in_specs=[
            pl.BlockSpec((TB, D), lambda i: (i, 0)),          # streamed activations
            pl.BlockSpec((TB, 1), lambda i: (i, 0)),          # streamed targets
            pl.BlockSpec((WP, W), lambda i: (0, 0)),          # resident packed weights
            pl.BlockSpec((2, W), lambda i: (0, 0)),           # resident packed biases
        ],
        out_specs=(
            pl.BlockSpec((1, 1), lambda i: (i, 0),
                         memory_space=pltpu.MemorySpace.SMEM),  # per-tile loss partial
            pl.BlockSpec((TB, W), lambda i: (i, 0)),            # lane-dense padded logits
        ),
        out_shape=(
            jax.ShapeDtypeStruct((n_tiles, 1), jnp.float32),
            jax.ShapeDtypeStruct((Bp, W), jnp.float32),
        ),
        compiler_params=pltpu.CompilerParams(
            dimension_semantics=("parallel",)),
        cost_estimate=cost,
    )(inp_p, tgt_p, w_pack, b_pack)

    loss = jnp.sum(partial_loss) * (1.0 / B)     # batch mean, compile-time reciprocal
    # Slice padded class columns off inside the jit (fused, no extra dispatch).
    # At loss-only scale, drop this output or store it bf16 to cut HBM writeback.
    return loss, pred_pad[:B, :num_classes]


# Jitted hot path: one fused program (pallas_call + partial-sum reduce + slice).
code2bit_forward = jax.jit(_code2bit_forward_impl, static_argnums=(3,))


if __name__ == "__main__":
    B, D, C = 8, 32, NUM_CLASSES

    key = jax.random.PRNGKey(0)
    k_inp, k_tgt, k_w1, k_b1, k_w2, k_b2 = jax.random.split(key, 6)

    inp = jax.random.normal(k_inp, (B, D), dtype=jnp.float32)
    tgt = jax.random.randint(k_tgt, (B,), 0, C, dtype=jnp.int32)

    # Deterministic parameter init mimicking torch.nn.Linear (uniform +-1/sqrt(fan_in)).
    bound = 1.0 / jnp.sqrt(jnp.float32(D))
    w1 = jax.random.uniform(k_w1, (D, D), jnp.float32, -bound, bound)
    b1 = jax.random.uniform(k_b1, (D,), jnp.float32, -bound, bound)
    w2 = jax.random.uniform(k_w2, (C, D), jnp.float32, -bound, bound)
    b2 = jax.random.uniform(k_b2, (C,), jnp.float32, -bound, bound)

    # Pure-JAX reference.
    h_ref = jax.nn.sigmoid(inp @ w1.T + b1)
    logits_ref = h_ref @ w2.T + b2
    lse_ref = jax.nn.logsumexp(logits_ref, axis=-1)
    loss_ref = jnp.mean(lse_ref - logits_ref[jnp.arange(B), tgt])

    # --- f32 MXU-operand path: matches the reference to tight tolerance ---
    params_f32 = prepare_params(w1, b1, w2, b2, matmul_dtype=jnp.float32)
    loss, pred = code2bit_forward(inp, tgt, params_f32, C)
    jax.block_until_ready((loss, pred))
    assert pred.shape == (B, C), "pred shape mismatch"
    assert jnp.allclose(pred, logits_ref, atol=1e-5), "pred mismatch (f32)"
    assert jnp.allclose(loss, loss_ref, atol=1e-5), "loss mismatch (f32)"

    # --- bf16 MXU-operand path (native MXU on v5e/v6e/v7x); looser tolerance
    #     is expected operand rounding, not a bug ---
    params_bf16 = prepare_params(w1, b1, w2, b2, matmul_dtype=jnp.bfloat16)
    loss_bf, pred_bf = code2bit_forward(inp, tgt, params_bf16, C)
    jax.block_until_ready((loss_bf, pred_bf))
    assert pred_bf.shape == (B, C), "pred shape mismatch (bf16)"
    assert jnp.allclose(pred_bf, logits_ref, atol=2e-1), "pred mismatch (bf16)"
    assert jnp.allclose(loss_bf, loss_ref, atol=1e-1), "loss mismatch (bf16)"

    print("KERNEL_OK")
</pallas_src>

<mosaic_0001>
module attributes {stable_mosaic.version = 11 : i64} {
  func.func @code2bit_kernel(%arg0: i32, %arg1: memref<8x32xf32, #tpu.memory_space<vmem>>, %arg2: memref<8x1xi32, #tpu.memory_space<vmem>>, %arg3: memref<160x128xf32, #tpu.memory_space<vmem>>, %arg4: memref<2x128xf32, #tpu.memory_space<vmem>>, %arg5: memref<1x1xf32, #tpu.memory_space<smem>>, %arg6: memref<8x128xf32, #tpu.memory_space<vmem>>) attributes {dimension_semantics = [#tpu.dimension_semantics<parallel>], iteration_bounds = array<i64: 1>, scalar_prefetch = 0 : i64, scratch_operands = 0 : i64, tpu.core_type = #tpu.core_type<tc>, window_params = [{transform_indices = @transform_0, window_bounds = array<i64: 8, 32>}, {transform_indices = @transform_1, window_bounds = array<i64: 8, 1>}, {pipeline_mode = #tpu.pipeline_mode<synchronous>, transform_indices = @transform_2, window_bounds = array<i64: 160, 128>}, {pipeline_mode = #tpu.pipeline_mode<synchronous>, transform_indices = @transform_3, window_bounds = array<i64: 2, 128>}, {transform_indices = @transform_4, window_bounds = array<i64: 1, 1>}, {transform_indices = @transform_5, window_bounds = array<i64: 8, 128>}]} {
    %c0 = arith.constant 0 : index
    %c0_0 = arith.constant 0 : index
    %0 = vector.load %arg1[%c0, %c0_0] : memref<8x32xf32, #tpu.memory_space<vmem>>, vector<8x32xf32>
    %c0_1 = arith.constant 0 : index
    %c0_2 = arith.constant 0 : index
    %1 = vector.load %arg3[%c0_1, %c0_2] : memref<160x128xf32, #tpu.memory_space<vmem>>, vector<32x128xf32>
    %c32 = arith.constant 32 : index
    %c0_3 = arith.constant 0 : index
    %2 = vector.load %arg3[%c32, %c0_3] : memref<160x128xf32, #tpu.memory_space<vmem>>, vector<128x128xf32>
    %c0_4 = arith.constant 0 : index
    %c0_5 = arith.constant 0 : index
    %3 = vector.load %arg4[%c0_4, %c0_5] : memref<2x128xf32, #tpu.memory_space<vmem>>, vector<1x128xf32>
    %c1 = arith.constant 1 : index
    %c0_6 = arith.constant 0 : index
    %4 = vector.load %arg4[%c1, %c0_6] : memref<2x128xf32, #tpu.memory_space<vmem>>, vector<1x128xf32>
    %cst = arith.constant dense<0.000000e+00> : vector<8x128xf32>
    %5 = tpu.matmul %0, %1, %cst {dimension_numbers = #tpu.dot_dimension_numbers<[1], [0], [0], [1], [0, 0, 1, 1], [], []>} : vector<8x32xf32>, vector<32x128xf32>, vector<8x128xf32> -> vector<8x128xf32>
    %6 = vector.broadcast %3 : vector<1x128xf32> to vector<8x128xf32>
    %7 = arith.addf %5, %6 : vector<8x128xf32>
    %8 = arith.negf %7 : vector<8x128xf32>
    %9 = math.exp %8 : vector<8x128xf32>
    %cst_7 = arith.constant 1.000000e+00 : f32
    %10 = vector.broadcast %cst_7 : f32 to vector<8x128xf32>
    %11 = arith.addf %10, %9 : vector<8x128xf32>
    %12 = arith.divf %10, %11 : vector<8x128xf32>
    %cst_8 = arith.constant dense<0.000000e+00> : vector<8x128xf32>
    %13 = tpu.matmul %12, %2, %cst_8 {dimension_numbers = #tpu.dot_dimension_numbers<[1], [0], [0], [1], [0, 0, 1, 1], [], []>} : vector<8x128xf32>, vector<128x128xf32>, vector<8x128xf32> -> vector<8x128xf32>
    %14 = vector.broadcast %4 : vector<1x128xf32> to vector<8x128xf32>
    %15 = arith.addf %13, %14 : vector<8x128xf32>
    %c0_9 = arith.constant 0 : index
    %c0_10 = arith.constant 0 : index
    %16 = vector.load %arg6[%c0_9, %c0_10] : memref<8x128xf32, #tpu.memory_space<vmem>>, vector<8x128xf32>
    tpu.vector_store %arg6[%c0_9, %c0_10], %15 {strides = array<i32>} : memref<8x128xf32, #tpu.memory_space<vmem>>, vector<8x128xf32>,
    %cst_11 = arith.constant dense<0xFF800000> : vector<8xf32>
    %17 = vector.multi_reduction <maximumf>, %15, %cst_11 [1] : vector<8x128xf32> to vector<8xf32>
    %18 = vector.shape_cast %17 : vector<8xf32> to vector<8x1xf32>
    %19 = vector.broadcast %18 : vector<8x1xf32> to vector<8x128xf32>
    %20 = arith.subf %15, %19 : vector<8x128xf32>
    %21 = math.exp %20 : vector<8x128xf32>
    %cst_12 = arith.constant dense<0.000000e+00> : vector<8xf32>
    %22 = vector.multi_reduction <add>, %21, %cst_12 [1] : vector<8x128xf32> to vector<8xf32>
    %23 = vector.shape_cast %22 : vector<8xf32> to vector<8x1xf32>
    %24 = math.log %23 : vector<8x1xf32>
    %25 = arith.addf %18, %24 : vector<8x1xf32>
    %26 = tpu.iota {dimensions = array<i32: 1>} : vector<8x128xi32>
    %c0_13 = arith.constant 0 : index
    %c0_14 = arith.constant 0 : index
    %27 = vector.load %arg2[%c0_13, %c0_14] : memref<8x1xi32, #tpu.memory_space<vmem>>, vector<8x1xi32>
    %28 = vector.broadcast %27 : vector<8x1xi32> to vector<8x128xi32>
    %29 = arith.cmpi eq, %26, %28 : vector<8x128xi32>
    %cst_15 = arith.constant 0.000000e+00 : f32
    %30 = vector.broadcast %cst_15 : f32 to vector<8x128xf32>
    %31 = arith.select %29, %15, %30 : vector<8x128xi1>, vector<8x128xf32>
    %cst_16 = arith.constant dense<0.000000e+00> : vector<8xf32>
    %32 = vector.multi_reduction <add>, %31, %cst_16 [1] : vector<8x128xf32> to vector<8xf32>
    %33 = vector.shape_cast %32 : vector<8xf32> to vector<8x1xf32>
    %c0_i32 = arith.constant 0 : i32
    %34 = vector.broadcast %c0_i32 : i32 to vector<8x1xi32>
    %35 = arith.cmpi sge, %27, %34 : vector<8x1xi32>
    %36 = arith.subf %25, %33 : vector<8x1xf32>
    %cst_17 = arith.constant 0.000000e+00 : f32
    %37 = vector.broadcast %cst_17 : f32 to vector<8x1xf32>
    %38 = arith.select %35, %36, %37 : vector<8x1xi1>, vector<8x1xf32>
    %39 = vector.shape_cast %38 : vector<8x1xf32> to vector<1x8x1xf32>
    %cst_18 = arith.constant dense<0.000000e+00> : vector<1xf32>
    %40 = vector.multi_reduction <add>, %39, %cst_18 [1, 2] : vector<1x8x1xf32> to vector<1xf32>
    %41 = vector.shape_cast %40 : vector<1xf32> to vector<1x1x1xf32>
    %42 = vector.extract %41[0, 0, 0] : f32 from vector<1x1x1xf32>
    %c0_19 = arith.constant 0 : index
    %c0_20 = arith.constant 0 : index
    %43 = memref.load %arg5[%c0_19, %c0_20] : memref<1x1xf32, #tpu.memory_space<smem>>
    memref.store %42, %arg5[%c0_19, %c0_20] : memref<1x1xf32, #tpu.memory_space<smem>>
    return
  }
  func.func @transform_0(%arg0: i32) -> (i32, i32) {
    %c0_i32 = arith.constant 0 : i32
    %c0_i32_0 = arith.constant 0 : i32
    return %arg0, %c0_i32 : i32, i32
  }
  func.func @transform_1(%arg0: i32) -> (i32, i32) {
    %c0_i32 = arith.constant 0 : i32
    %c0_i32_0 = arith.constant 0 : i32
    return %arg0, %c0_i32 : i32, i32
  }
  func.func @transform_2(%arg0: i32) -> (i32, i32) {
    %c0_i32 = arith.constant 0 : i32
    %c0_i32_0 = arith.constant 0 : i32
    %c0_i32_1 = arith.constant 0 : i32
    return %c0_i32, %c0_i32_0 : i32, i32
  }
  func.func @transform_3(%arg0: i32) -> (i32, i32) {
    %c0_i32 = arith.constant 0 : i32
    %c0_i32_0 = arith.constant 0 : i32
    %c0_i32_1 = arith.constant 0 : i32
    return %c0_i32, %c0_i32_0 : i32, i32
  }
  func.func @transform_4(%arg0: i32) -> (i32, i32) {
    %c0_i32 = arith.constant 0 : i32
    %c0_i32_0 = arith.constant 0 : i32
    return %arg0, %c0_i32 : i32, i32
  }
  func.func @transform_5(%arg0: i32) -> (i32, i32) {
    %c0_i32 = arith.constant 0 : i32
    %c0_i32_0 = arith.constant 0 : i32
    return %arg0, %c0_i32 : i32, i32
  }
}

</mosaic_0001>

<bundles_post_ra>
// kernel: _code2bit_forward_impl.1
= control target key start
LH: loop header
LB: loop body
LE: loop exit
PB: predicated region body
PF: predicated region fallthrough
CT: control target
= control target key end

     0   :  { %11 = vsyncpa [#allocation3], 0  ;;  %s507_s0 = inlined_call_operand.vmem [shape: f32[8,32], index: 0, kind: input, shape index: {}]   ;;  %s508_s1 = inlined_call_operand.vmem [shape: s32[8,1], index: 1, kind: input, shape index: {}]   ;;  %s509_s2 = inlined_call_operand.hbm [shape: f32[160,128], index: 2, kind: input, shape index: {}]   ;;  %s510_s3 = inlined_call_operand.vmem [shape: f32[2,128], index: 3, kind: input, shape index: {}]   ;;  %s511_s4 = inlined_call_operand.hbm [shape: f32[1,1], index: 4, kind: output, shape index: {0}]   ;;  %s512_s5 = inlined_call_operand.hbm [shape: f32[8,128], index: 5, kind: output, shape index: {1}]  }
   0x1   :  { %12 = vsyncpa [#allocation5], 0 }
   0x2   :  { %13 = vsyncpa [#allocation4], 0  ;;  %s426_s18 = smov [#allocation2]  }
   0x3   :  { %s23_s19 = sshll.u32 %s426_s18, 4  ;;  %s24_s19 = int_to_ptr.vmem [resolvable:$true] %s23_s19 }
   0x4   :  { %s380_s20 = scalar_lea.vmem %s24_s19, 2560  ;;  %p385_p1 = scmp.lt.s32.totalorder %s24_s19, %s24_s19 }
   0x5   :  { %p381_p0 = scmp.ne.s32.totalorder %s24_s19, %s380_s20  ;;  %p386_p2 = scmp.lt.s32.totalorder %s380_s20, %s380_s20 }
   0x7   :  { %p387_p3 = por %p386_p2, %p385_p1 }
   0x9   :  { %p388_p4 = pnand %p387_p3, %p381_p0 }
   0xb   :  { %391 = shalt.err (!%p388_p4)
}
   0xc   :  { %s427_s21 = smov 128   ;;  %s428_s22 = smov 8  }
   0xd   :  { %29 = dma.hbm_to_vmem [thread:$0]  %s509_s2, 2560, %s24_s19, [#allocation3], %s427_s21, %s427_s21, %s428_s22  }
   0xe   :  { %420 = dma.done.wait [#allocation3], 2560  }
   0xf   :  { %421 = vsyncadd [#allocation3], 4294964736  ;;  %v429_v0 = vmov 0.0   ;;  %vm430_vm0 = vmmov 0   ;;  %v39_v1 = vld [vmem:[#allocation2 + $0x18] sm:$0xff]  ;;  %v38_v2 = vld [vmem:[#allocation2 + $0x10] sm:$0xff]  ;;  %v227_v39 = vlaneseq }
  0x10   :  { %307 = vmatprep.subr.mxu0 %v429_v0  ;;  %315 = vmatprep.mubr.msk.f32.mxu0 %vm430_vm0, %v429_v0  ;;  %v37_v3 = vld [vmem:[#allocation2 + $0x8] sm:$0xff]  ;;  %v36_v4 = vld [vmem:[#allocation2] sm:$0xff]  ;;  %vm62_vm1 = vcmask 261120   ;;  %v55_v6 = vld [vmem:[#allocation2 + $0x98] sm:$0xff]  ;;  %v431_v30 = vmov 0   ;;  %vm240_vm4 = vcmask 7168  }
  0x11   :  { %318 = vmatprep.subr.mxu1 %v429_v0  ;;  %350 = vmatprep.mubr.msk.f32.mxu1 %vm430_vm0, %v429_v0  ;;  %v35_v5 = vld [vmem:[%s507_s0] sm:$0xff]  ;;  %v54_v7 = vld [vmem:[#allocation2 + $0x90] sm:$0xff]  ;;  %v53_v8 = vld [vmem:[#allocation2 + $0x88] sm:$0xff]  ;;  %v228_v40 = vand.u32 127, %v227_v39 }
  0x12   :  { %308 = vmatpush3.msra.mxu0 %v39_v1  ;;  %319 = vmatpush3.msra.mxu1 %v55_v6  ;;  %v52_v9 = vld [vmem:[#allocation2 + $0x80] sm:$0xff]  ;;  %v51_v10 = vld [vmem:[#allocation2 + $0x78] sm:$0xff]  ;;  %v50_v11 = vld [vmem:[#allocation2 + $0x70] sm:$0xff] }
  0x13   :  { %309 = vmatprep.subr.mxu0 %v429_v0  ;;  %320 = vmatprep.subr.mxu1 %v429_v0  ;;  %v49_v12 = vld [vmem:[#allocation2 + $0x68] sm:$0xff]  ;;  %v48_v13 = vld [vmem:[#allocation2 + $0x60] sm:$0xff]  ;;  %v47_v14 = vld [vmem:[#allocation2 + $0x58] sm:$0xff] }
  0x14   :  { %310 = vmatpush3.msra.mxu0 %v38_v2  ;;  %321 = vmatpush3.msra.mxu1 %v54_v7  ;;  %v46_v15 = vld [vmem:[#allocation2 + $0x50] sm:$0xff]  ;;  %v45_v16 = vld [vmem:[#allocation2 + $0x48] sm:$0xff]  ;;  %v44_v17 = vld [vmem:[#allocation2 + $0x40] sm:$0xff] }
  0x15   :  { %311 = vmatprep.subr.mxu0 %v429_v0  ;;  %322 = vmatprep.subr.mxu1 %v429_v0  ;;  %v43_v18 = vld [vmem:[#allocation2 + $0x38] sm:$0xff]  ;;  %v42_v19 = vld [vmem:[#allocation2 + $0x30] sm:$0xff]  ;;  %v41_v20 = vld [vmem:[#allocation2 + $0x28] sm:$0xff] }
  0x16   :  { %312 = vmatpush3.msra.mxu0 %v37_v3  ;;  %323 = vmatpush3.msra.mxu1 %v53_v8  ;;  %v40_v21 = vld [vmem:[#allocation2 + $0x20] sm:$0xff] }
  0x17   :  { %313 = vmatprep.subr.mxu0 %v429_v0  ;;  %324 = vmatprep.subr.mxu1 %v429_v0  ;;  %v281_v22 = vld [vmem:[%s510_s3] ss:$0 sm:$0xff]  ;;  %v284_v31 = vld [vmem:[%s510_s3 + $0x1] ss:$0 sm:$0xff] }
  0x18   :  { %314 = vmatpush3.msra.mxu0 %v36_v4  ;;  %325 = vmatpush3.msra.mxu1 %v52_v9  ;;  %v229_v35 = vld [vmem:[%s508_s1] sm:$0xff]  ;;  %s432_s1 = smov [#allocation7]  }
  0x19   :  { %316 = vmatmul.mubr.msk.f32.vlgmr.msra.gmra.mxu0 %vm62_vm1, %v35_v5  ;;  %326 = vmatprep.subr.mxu1 %v429_v0  ;;  %vm237_vm3 = vcmp.ge.s32.totalorder %v229_v35, 0  ;;  %s267_s3 = sshll.u32 %s432_s1, 4  ;;  %s268_s3 = int_to_ptr.vmem [resolvable:$true] %s267_s3 }
  0x1a   :  { %327 = vmatpush3.msra.mxu1 %v51_v10  ;;  %363 = vset.pattern.permute.xlu0 %v431_v30  ;;  %s392_s6 = scalar_lea.vmem %s268_s3, 128  ;;  %p397_p6 = scmp.lt.s32.totalorder %s268_s3, %s268_s3 }
  0x1b   :  { %328 = vmatprep.subr.mxu1 %v429_v0  ;;  %p393_p5 = scmp.ne.s32.totalorder %s268_s3, %s392_s6  ;;  %p398_p7 = scmp.lt.s32.totalorder %s392_s6, %s392_s6 }
  0x1c   :  { %329 = vmatpush3.msra.mxu1 %v50_v11 }
  0x1d   :  { %330 = vmatprep.subr.mxu1 %v429_v0  ;;  %p399_p8 = por %p398_p7, %p397_p6 }
  0x1e   :  { %331 = vmatpush3.msra.mxu1 %v49_v12 }
  0x1f   :  { %332 = vmatprep.subr.mxu1 %v429_v0  ;;  %p400_p9 = pnand %p399_p8, %p393_p5 }
  0x20   :  { %333 = vmatpush3.msra.mxu1 %v48_v13 }
  0x21   :  { %334 = vmatprep.subr.mxu1 %v429_v0 }
  0x22   :  { %335 = vmatpush3.msra.mxu1 %v47_v14 }
  0x23   :  { %336 = vmatprep.subr.mxu1 %v429_v0 }
  0x24   :  { %337 = vmatpush3.msra.mxu1 %v46_v15 }
  0x25   :  { %338 = vmatprep.subr.mxu1 %v429_v0 }
  0x26   :  { %339 = vmatpush3.msra.mxu1 %v45_v16 }
  0x27   :  { %340 = vmatprep.subr.mxu1 %v429_v0 }
  0x28   :  { %341 = vmatpush3.msra.mxu1 %v44_v17 }
  0x29   :  { %342 = vmatprep.subr.mxu1 %v429_v0 }
  0x2a   :  { %343 = vmatpush3.msra.mxu1 %v43_v18 }
  0x2b   :  { %344 = vmatprep.subr.mxu1 %v429_v0 }
  0x2c   :  { %345 = vmatpush3.msra.mxu1 %v42_v19 }
  0x2d   :  { %346 = vmatprep.subr.mxu1 %v429_v0 }
  0x2e   :  { %347 = vmatpush3.msra.mxu1 %v41_v20 }
  0x2f   :  { %348 = vmatprep.subr.mxu1 %v429_v0 }
  0x30   :  { %349 = vmatpush3.msra.mxu1 %v40_v21 }
  0xd9   :  { %v132_v23 = vpop.f32.mrf.mxu0 }
  0xda   :  { %v133_v24 = vadd.f32 %v281_v22, %v132_v23 }
  0xdb   :  { %v317_v25 = vpop.f32.mrf.mxu0 }
  0xdc   :  { %v283_v26 = vmul.f32 -1.442695, %v133_v24 }
  0xde   :  { %364 = vpow2.f32 %v283_v26 }
  0xeb   :  { %v365_v27 = vpop.eup %364 }
  0xec   :  { %v139_v28 = vadd.f32 1.0, %v365_v27 }
  0xee   :  { %366 = vrcp.f32 %v139_v28 }
  0xfb   :  { %v367_v29 = vpop.eup %366 }
  0xfc   :  { %351 = vmatmul.mubr.f32.vlgmr.msra.gmra.mxu1 %v367_v29 }
 0x1bc   :  { %v212_v32 = vpop.f32.mrf.mxu1 }
 0x1bd   :  { %v213_v33 = vadd.f32 %v284_v31, %v212_v32 }
 0x1be   :  { %v352_v34 = vpop.f32.mrf.mxu1 }
 0x1bf   :  { %216 = vst [vmem:[#allocation7] sm:$0xff] %v213_v33  ;;  %217 = vmax.xlane.f32.xlu0 %v213_v33 }
 0x1d5   :  { %231 = vperm.xlu0 %363, %v229_v35  }
 0x248   :  { %v218_v36 = vpop.xlane.xlu0 %217 }
 0x249   :  { %v219_v37 = vsub.f32 %v213_v33, %v218_v36 }
 0x24b   :  { %v220_v38 = vmul.f32 1.442695, %v219_v37 }
 0x24d   :  { %368 = vpow2.f32 %v220_v38 }
 0x250   :  { %v232_v41 = vpop.permute.xlu0 %231 }
 0x251   :  { %vm233_vm2 = vcmp.eq.s32.totalorder %v228_v40, %v232_v41 }
 0x252   :  { %v234_v43 = vsel %vm233_vm2, %v213_v33, 0.0 }
 0x25a   :  { %v369_v42 = vpop.eup %368 }
 0x25b   :  { %222 = vadd.xlane.f32.xlu1 %v369_v42 }
 0x25f   :  { %235 = vadd.xlane.f32.xlu1 %v234_v43 }
 0x2e4   :  { %v223_v44 = vpop.xlane.xlu1 %222 }
 0x2e5   :  { %370 = vlog2.f32 %v223_v44 }
 0x2e8   :  { %v236_v48 = vpop.xlane.xlu1 %235 }
 0x2f2   :  { %v371_v45 = vpop.eup %370 }
 0x2f3   :  { %v225_v46 = vmul.f32 0.6931472, %v371_v45 }
 0x2f5   :  { %v226_v47 = vadd.f32 %v225_v46, %v218_v36 }
 0x2f7   :  { %v238_v49 = vsub.f32 %v226_v47, %v236_v48 }
 0x2f9   :  { %v239_v50 = vsel %vm237_vm3, %v238_v49, 0.0 }
 0x2fa   :  { %v241_v51 = vsel %vm240_vm4, %v239_v50, 0.0 }
 0x2fb   :  { %242 = vadd.xlane.f32.xlu1 %v241_v51 }
 0x2fc   :  { %403 = shalt.err (!%p400_p9)
}
 0x2fd   :  { %270 = dma.vmem_to_hbm [thread:$0]  %s268_s3, 128, %s512_s5, [#allocation4]  }
 0x2fe   :  { %s433_s10 = smov [#allocation6]  }
 0x384   :  { %v243_v52 = vpop.xlane.xlu1 %242 }
 0x385   :  { %v244_v53 = vrot.slane %v243_v52, 4 }
 0x387   :  { %v245_v54 = vadd.f32 %v244_v53, %v243_v52 }
 0x389   :  { %v246_v55 = vrot.slane %v245_v54, 2 }
 0x38b   :  { %v247_v56 = vadd.f32 %v246_v55, %v245_v54 }
 0x38d   :  { %v248_v57 = vrot.slane %v247_v56, 1 }
 0x38f   :  { %v249_v58 = vadd.f32 %v248_v57, %v247_v56 }
 0x391   :  { %353 = vpush %v249_v58 }
 0x3c2   :  { %s354_s9 = spop %353 }
 0x3c3   :  { %252 = sst [smem:[#allocation6]] %s354_s9 }
 0x3c4   :  { %260 = dma.smem_to_hbm %s433_s10, 16, %s511_s4, [#allocation5]  }
 0x3c5   :  { %422 = dma.done.wait [#allocation5], 16  }
 0x3c6   :  { %423 = vsyncadd [#allocation5], 4294967280 }
 0x3c7   :  { %424 = dma.done.wait [#allocation4], 128  }
 0x3c8   :  { %425 = vsyncadd [#allocation4], 4294967168 }
 0x3c9   :  { %277 = sfence }
 0x3ca   :  { %278 = vsyncpa [#allocation3], 1 }
 0x3cb   :  { %279 = vsyncpa [#allocation4], 1 }
 0x3cc   :  { %280 = vsyncpa [#allocation5], 1 }

</bundles_post_ra>
